<compile_context>
chip_gen: v7x
topology: tpu7x:2x2x1
jax: 0.10.0
libtpu: 0.0.40
codegen_flags: <defaults>
</compile_context>

<pallas_src>
import jax
import jax.numpy as jnp
from jax.experimental import pallas as pl
from jax.experimental.pallas import tpu as pltpu

EPS = 1e-5  # nn.BatchNorm1d default eps


def graph_res_block_kernel(x_ref, amix_ref, w_ref, g_ref, be_ref, out_ref, h_ref):
    """One grid step == one GraphConvBlock.

    x_ref   : (B, VD)       input features (resident across both steps)
    amix_ref: (VD, VD)      kron(adj^T, I_D) (resident across both steps)
    w_ref   : (1, VD, VD)   this step's fused block-diagonal Linear weight
    g_ref   : (1, 1, VD)    this step's BN gamma (f32)
    be_ref  : (1, 1, VD)    this step's BN beta  (f32)
    out_ref : (B, VD)       residual output, written on the last step
    h_ref   : (B, VD) f32   running activation (VMEM scratch)
    """
    step = pl.program_id(0)
    nb = x_ref.shape[0]
    mx_dtype = w_ref.dtype  # matmul-operand dtype (bf16 by default)

    @pl.when(step == 0)
    def _():
        h_ref[...] = x_ref[...].astype(jnp.float32)

    h = h_ref[...]

    # V per-vertex Linears fused into one (B, VD) @ (VD, VD) MXU matmul.
    # Linear bias omitted: exactly cancelled by train-mode BN mean subtraction.
    z = jnp.dot(h.astype(mx_dtype), w_ref[0], preferred_element_type=jnp.float32)

    # BatchNorm1d (train mode): batch stats over axis 0, biased variance.
    # Single pass: one pair of cross-sublane reductions; gamma folded into scale.
    inv_b = 1.0 / nb
    s1 = jnp.sum(z, axis=0, keepdims=True)
    s2 = jnp.sum(z * z, axis=0, keepdims=True)
    mu = s1 * inv_b
    var = jnp.maximum(s2 * inv_b - mu * mu, 0.0)
    scale = g_ref[0] * jax.lax.rsqrt(var + EPS)          # (1, VD)
    y = (z - mu) * scale + be_ref[0]

    # Adjacency mixing as one matmul against kron(adj^T, I_D), then ReLU.
    # NOTE: with B=4 only 4 rows stream per weight load (MXU M-starved); that's
    # fine here because the kernel is weight-byte bound, but real deployments
    # should grow M with real samples (never zero-pad: BN stats would change).
    y = jnp.dot(y.astype(mx_dtype), amix_ref[...], preferred_element_type=jnp.float32)
    h_new = jnp.maximum(y, 0.0)
    h_ref[...] = h_new

    @pl.when(step == pl.num_programs(0) - 1)
    def _():
        out_ref[...] = (h_new + x_ref[...].astype(jnp.float32)).astype(out_ref.dtype)


def prepare_graph_res_block(adj, params1, params2, mxu_dtype=jnp.bfloat16):
    """One-time (init-time) folding of module parameters into kernel operands.

    paramsN = (W (V, Din, Dout), b (V, D), gamma (V, D), beta (V, D)).
    The Linear bias is dropped (mathematically cancelled by train-mode BN).
    Returns (amix, w_stack, gamma_stack, beta_stack) ready for graph_res_block.
    """
    V = adj.shape[0]
    D = params1[0].shape[-1]
    VD = V * D
    eye_v = jnp.eye(V, dtype=jnp.float32)
    eye_d = jnp.eye(D, dtype=jnp.float32)

    def fold(params):
        w, _b, g, be = params
        # block-diagonal weight: W_bd[v*D+i, u*D+j] = w[v, i, j] * delta(v, u)
        w_bd = jnp.einsum('vij,vu->viuj', w.astype(jnp.float32), eye_v).reshape(VD, VD)
        return (w_bd.astype(mxu_dtype),
                g.reshape(1, VD).astype(jnp.float32),
                be.reshape(1, VD).astype(jnp.float32))

    w1, g1, be1 = fold(params1)
    w2, g2, be2 = fold(params2)

    # adjacency mixing matrix: M[u*D+d', v*D+d] = adj[v, u] * delta(d', d)
    amix = jnp.einsum('vu,ij->uivj', adj.astype(jnp.float32), eye_d).reshape(VD, VD)

    return (amix.astype(mxu_dtype),
            jnp.stack([w1, w2], axis=0),     # (2, VD, VD)
            jnp.stack([g1, g2], axis=0),     # (2, 1, VD)  f32
            jnp.stack([be1, be2], axis=0))   # (2, 1, VD)  f32


def graph_res_block(feat, prepared):
    """feat: (B, V, D); prepared: output of prepare_graph_res_block()."""
    amix, w_stack, g_stack, be_stack = prepared
    B, V, D = feat.shape
    VD = V * D
    assert w_stack.shape == (2, VD, VD)

    x2d = feat.reshape(B, VD)  # contiguous view of (B, V, D) memory order — free

    mx_bytes = jnp.dtype(w_stack.dtype).itemsize
    flops = 2 * 2 * 2 * B * VD * VD          # 2 blocks x 2 matmuls x 2*B*VD*VD
    bytes_accessed = int((w_stack.size + amix.size) * mx_bytes
                         + (g_stack.size + be_stack.size) * 4
                         + 2 * B * VD * 4)

    out2d = pl.pallas_call(
        graph_res_block_kernel,
        out_shape=jax.ShapeDtypeStruct((B, VD), feat.dtype),
        grid_spec=pltpu.PrefetchScalarGridSpec(
            num_scalar_prefetch=0,
            grid=(2,),  # one step per GraphConvBlock -> w2 prefetch overlaps block 1
            in_specs=[
                pl.BlockSpec((B, VD), lambda s: (0, 0)),         # x (resident)
                pl.BlockSpec((VD, VD), lambda s: (0, 0)),        # amix (resident)
                pl.BlockSpec((1, VD, VD), lambda s: (s, 0, 0)),  # fused weight per block
                pl.BlockSpec((1, 1, VD), lambda s: (s, 0, 0)),   # BN gamma per block
                pl.BlockSpec((1, 1, VD), lambda s: (s, 0, 0)),   # BN beta per block
            ],
            out_specs=pl.BlockSpec((B, VD), lambda s: (0, 0)),   # resident, lane-dense
            scratch_shapes=[pltpu.VMEM((B, VD), jnp.float32)],
        ),
        compiler_params=pltpu.CompilerParams(
            dimension_semantics=("arbitrary",)),
        cost_estimate=pl.CostEstimate(flops=flops,
                                      transcendentals=2 * VD,
                                      bytes_accessed=bytes_accessed),
    )(x2d, amix, w_stack, g_stack, be_stack)

    return out2d.reshape(B, V, D)


# ---------------- pure-JAX reference (for correctness check) ----------------
def _graph_conv_block_ref(feat, adj, w, b, g, be):
    z = jnp.einsum('bvd,vde->bve', feat, w) + b[None]
    mu = jnp.mean(z, axis=0, keepdims=True)
    var = jnp.mean((z - mu) ** 2, axis=0, keepdims=True)
    y = g[None] * (z - mu) / jnp.sqrt(var + EPS) + be[None]
    y = jnp.einsum('vu,bud->bvd', adj, y)
    return jnp.maximum(y, 0.0)


def _graph_res_block_ref(feat, adj, p1, p2):
    h = _graph_conv_block_ref(feat, adj, *p1)
    h = _graph_conv_block_ref(h, adj, *p2)
    return h + feat


if __name__ == "__main__":
    B, V, D = 4, 8, 32  # batch, vertex_num (= adj.shape[0]), dim

    key = jax.random.PRNGKey(0)
    ks = jax.random.split(key, 3)

    feat = jax.random.normal(ks[0], (B, V, D), dtype=jnp.float32)

    # deterministic adjacency: ring graph + self loops, row-normalized
    eye = jnp.eye(V, dtype=jnp.float32)
    ring = jnp.roll(eye, 1, axis=1) + jnp.roll(eye, -1, axis=1)
    adj = eye + ring
    adj = adj / jnp.sum(adj, axis=1, keepdims=True)

    def init_block(k):
        k1, k2, k3, k4 = jax.random.split(k, 4)
        w = 0.1 * jax.random.normal(k1, (V, D, D), dtype=jnp.float32)      # Linear weight (Din, Dout)
        b = 0.1 * jax.random.normal(k2, (V, D), dtype=jnp.float32)         # Linear bias (dead under train-mode BN)
        g = 1.0 + 0.1 * jax.random.normal(k3, (V, D), dtype=jnp.float32)   # BN gamma
        be = 0.1 * jax.random.normal(k4, (V, D), dtype=jnp.float32)        # BN beta
        return (w, b, g, be)

    p1 = init_block(ks[1])
    p2 = init_block(ks[2])

    ref = _graph_res_block_ref(feat, adj, p1, p2)

    # 1) exact-semantics check: f32 matmul operands, tight tolerance
    prep_f32 = prepare_graph_res_block(adj, p1, p2, mxu_dtype=jnp.float32)
    out_f32 = jax.block_until_ready(graph_res_block(feat, prep_f32))
    assert out_f32.shape == (B, V, D)
    err_f32 = float(jnp.max(jnp.abs(out_f32 - ref)))
    assert jnp.allclose(out_f32, ref, atol=1e-4, rtol=1e-4), f"f32 max abs err {err_f32}"

    # 2) perf-default path: bf16 matmul operands (f32 accumulation / BN math)
    prep_bf16 = prepare_graph_res_block(adj, p1, p2, mxu_dtype=jnp.bfloat16)
    out_bf16 = jax.block_until_ready(graph_res_block(feat, prep_bf16))
    err_bf16 = float(jnp.max(jnp.abs(out_bf16 - ref)))
    assert jnp.allclose(out_bf16, ref, atol=5e-2, rtol=5e-2), f"bf16 max abs err {err_bf16}"

    print("KERNEL_OK")
</pallas_src>

<mosaic_0001>
module attributes {stable_mosaic.version = 11 : i64} {
  func.func @graph_res_block_kernel(%arg0: i32, %arg1: memref<4x256xf32, #tpu.memory_space<vmem>>, %arg2: memref<256x256xf32, #tpu.memory_space<vmem>>, %arg3: memref<1x256x256xf32, #tpu.memory_space<vmem>>, %arg4: memref<1x1x256xf32, #tpu.memory_space<vmem>>, %arg5: memref<1x1x256xf32, #tpu.memory_space<vmem>>, %arg6: memref<4x256xf32, #tpu.memory_space<vmem>>, %arg7: memref<4x256xf32, #tpu.memory_space<vmem>>) attributes {dimension_semantics = [#tpu.dimension_semantics<arbitrary>], iteration_bounds = array<i64: 2>, scalar_prefetch = 0 : i64, scratch_operands = 1 : i64, tpu.core_type = #tpu.core_type<tc>, window_params = [{pipeline_mode = #tpu.pipeline_mode<synchronous>, transform_indices = @transform_0, window_bounds = array<i64: 4, 256>}, {pipeline_mode = #tpu.pipeline_mode<synchronous>, transform_indices = @transform_1, window_bounds = array<i64: 256, 256>}, {transform_indices = @transform_2, window_bounds = array<i64: 1, 256, 256>}, {transform_indices = @transform_3, window_bounds = array<i64: 1, 1, 256>}, {transform_indices = @transform_4, window_bounds = array<i64: 1, 1, 256>}, {pipeline_mode = #tpu.pipeline_mode<synchronous>, transform_indices = @transform_5, window_bounds = array<i64: 4, 256>}]} {
    %c0_i32 = arith.constant 0 : i32
    %0 = arith.cmpi eq, %arg0, %c0_i32 : i32
    %1 = arith.extui %0 : i1 to i32
    %c0_i32_0 = arith.constant 0 : i32
    %2 = arith.cmpi ne, %1, %c0_i32_0 : i32
    scf.if %2 {
      %c0_24 = arith.constant 0 : index
      %c0_25 = arith.constant 0 : index
      %42 = vector.load %arg1[%c0_24, %c0_25] : memref<4x256xf32, #tpu.memory_space<vmem>>, vector<4x256xf32>
      %c0_26 = arith.constant 0 : index
      %c0_27 = arith.constant 0 : index
      %43 = vector.load %arg7[%c0_26, %c0_27] : memref<4x256xf32, #tpu.memory_space<vmem>>, vector<4x256xf32>
      tpu.vector_store %arg7[%c0_26, %c0_27], %42 {strides = array<i32>} : memref<4x256xf32, #tpu.memory_space<vmem>>, vector<4x256xf32>,
    } else {
    }
    %c0 = arith.constant 0 : index
    %c0_1 = arith.constant 0 : index
    %3 = vector.load %arg7[%c0, %c0_1] : memref<4x256xf32, #tpu.memory_space<vmem>>, vector<4x256xf32>
    %c0_2 = arith.constant 0 : index
    %c0_3 = arith.constant 0 : index
    %c0_4 = arith.constant 0 : index
    %4 = vector.load %arg3[%c0_2, %c0_3, %c0_4] : memref<1x256x256xf32, #tpu.memory_space<vmem>>, vector<1x256x256xf32>
    %5 = vector.shape_cast %4 : vector<1x256x256xf32> to vector<256x256xf32>
    %cst = arith.constant dense<0.000000e+00> : vector<4x256xf32>
    %6 = tpu.matmul %3, %5, %cst {dimension_numbers = #tpu.dot_dimension_numbers<[1], [0], [0], [1], [0, 0, 1, 1], [], []>} : vector<4x256xf32>, vector<256x256xf32>, vector<4x256xf32> -> vector<4x256xf32>
    %cst_5 = arith.constant dense<0.000000e+00> : vector<256xf32>
    %7 = vector.multi_reduction <add>, %6, %cst_5 [0] : vector<4x256xf32> to vector<256xf32>
    %8 = vector.shape_cast %7 : vector<256xf32> to vector<1x256xf32>
    %9 = arith.mulf %6, %6 : vector<4x256xf32>
    %cst_6 = arith.constant dense<0.000000e+00> : vector<256xf32>
    %10 = vector.multi_reduction <add>, %9, %cst_6 [0] : vector<4x256xf32> to vector<256xf32>
    %11 = vector.shape_cast %10 : vector<256xf32> to vector<1x256xf32>
    %cst_7 = arith.constant 2.500000e-01 : f32
    %12 = vector.broadcast %cst_7 : f32 to vector<1x256xf32>
    %13 = arith.mulf %8, %12 : vector<1x256xf32>
    %cst_8 = arith.constant 2.500000e-01 : f32
    %14 = vector.broadcast %cst_8 : f32 to vector<1x256xf32>
    %15 = arith.mulf %11, %14 : vector<1x256xf32>
    %16 = arith.mulf %13, %13 : vector<1x256xf32>
    %17 = arith.subf %15, %16 : vector<1x256xf32>
    %cst_9 = arith.constant 0.000000e+00 : f32
    %18 = vector.broadcast %cst_9 : f32 to vector<1x256xf32>
    %19 = arith.maximumf %17, %18 : vector<1x256xf32>
    %c0_10 = arith.constant 0 : index
    %c0_11 = arith.constant 0 : index
    %c0_12 = arith.constant 0 : index
    %20 = vector.load %arg4[%c0_10, %c0_11, %c0_12] : memref<1x1x256xf32, #tpu.memory_space<vmem>>, vector<1x1x256xf32>
    %21 = vector.shape_cast %20 : vector<1x1x256xf32> to vector<1x256xf32>
    %cst_13 = arith.constant 9.99999974E-6 : f32
    %22 = vector.broadcast %cst_13 : f32 to vector<1x256xf32>
    %23 = arith.addf %19, %22 : vector<1x256xf32>
    %24 = math.rsqrt %23 : vector<1x256xf32>
    %25 = arith.mulf %21, %24 : vector<1x256xf32>
    %26 = vector.broadcast %13 : vector<1x256xf32> to vector<4x256xf32>
    %27 = arith.subf %6, %26 : vector<4x256xf32>
    %28 = vector.broadcast %25 : vector<1x256xf32> to vector<4x256xf32>
    %29 = arith.mulf %27, %28 : vector<4x256xf32>
    %c0_14 = arith.constant 0 : index
    %c0_15 = arith.constant 0 : index
    %c0_16 = arith.constant 0 : index
    %30 = vector.load %arg5[%c0_14, %c0_15, %c0_16] : memref<1x1x256xf32, #tpu.memory_space<vmem>>, vector<1x1x256xf32>
    %31 = vector.shape_cast %30 : vector<1x1x256xf32> to vector<1x256xf32>
    %32 = vector.broadcast %31 : vector<1x256xf32> to vector<4x256xf32>
    %33 = arith.addf %29, %32 : vector<4x256xf32>
    %c0_17 = arith.constant 0 : index
    %c0_18 = arith.constant 0 : index
    %34 = vector.load %arg2[%c0_17, %c0_18] : memref<256x256xf32, #tpu.memory_space<vmem>>, vector<256x256xf32>
    %cst_19 = arith.constant dense<0.000000e+00> : vector<4x256xf32>
    %35 = tpu.matmul %33, %34, %cst_19 {dimension_numbers = #tpu.dot_dimension_numbers<[1], [0], [0], [1], [0, 0, 1, 1], [], []>} : vector<4x256xf32>, vector<256x256xf32>, vector<4x256xf32> -> vector<4x256xf32>
    %cst_20 = arith.constant 0.000000e+00 : f32
    %36 = vector.broadcast %cst_20 : f32 to vector<4x256xf32>
    %37 = arith.maximumf %35, %36 : vector<4x256xf32>
    %c0_21 = arith.constant 0 : index
    %c0_22 = arith.constant 0 : index
    %38 = vector.load %arg7[%c0_21, %c0_22] : memref<4x256xf32, #tpu.memory_space<vmem>>, vector<4x256xf32>
    tpu.vector_store %arg7[%c0_21, %c0_22], %37 {strides = array<i32>} : memref<4x256xf32, #tpu.memory_space<vmem>>, vector<4x256xf32>,
    %c1_i32 = arith.constant 1 : i32
    %39 = arith.cmpi eq, %arg0, %c1_i32 : i32
    %40 = arith.extui %39 : i1 to i32
    %c0_i32_23 = arith.constant 0 : i32
    %41 = arith.cmpi ne, %40, %c0_i32_23 : i32
    scf.if %41 {
      %c0_24 = arith.constant 0 : index
      %c0_25 = arith.constant 0 : index
      %42 = vector.load %arg1[%c0_24, %c0_25] : memref<4x256xf32, #tpu.memory_space<vmem>>, vector<4x256xf32>
      %43 = arith.addf %37, %42 : vector<4x256xf32>
      %c0_26 = arith.constant 0 : index
      %c0_27 = arith.constant 0 : index
      %44 = vector.load %arg6[%c0_26, %c0_27] : memref<4x256xf32, #tpu.memory_space<vmem>>, vector<4x256xf32>
      tpu.vector_store %arg6[%c0_26, %c0_27], %43 {strides = array<i32>} : memref<4x256xf32, #tpu.memory_space<vmem>>, vector<4x256xf32>,
    } else {
    }
    return
  }
  func.func @transform_0(%arg0: i32) -> (i32, i32) {
    %c0_i32 = arith.constant 0 : i32
    %c0_i32_0 = arith.constant 0 : i32
    %c0_i32_1 = arith.constant 0 : i32
    return %c0_i32, %c0_i32_0 : i32, i32
  }
  func.func @transform_1(%arg0: i32) -> (i32, i32) {
    %c0_i32 = arith.constant 0 : i32
    %c0_i32_0 = arith.constant 0 : i32
    %c0_i32_1 = arith.constant 0 : i32
    return %c0_i32, %c0_i32_0 : i32, i32
  }
  func.func @transform_2(%arg0: i32) -> (i32, i32, i32) {
    %c0_i32 = arith.constant 0 : i32
    %c0_i32_0 = arith.constant 0 : i32
    %c0_i32_1 = arith.constant 0 : i32
    return %arg0, %c0_i32, %c0_i32_0 : i32, i32, i32
  }
  func.func @transform_3(%arg0: i32) -> (i32, i32, i32) {
    %c0_i32 = arith.constant 0 : i32
    %c0_i32_0 = arith.constant 0 : i32
    %c0_i32_1 = arith.constant 0 : i32
    return %arg0, %c0_i32, %c0_i32_0 : i32, i32, i32
  }
  func.func @transform_4(%arg0: i32) -> (i32, i32, i32) {
    %c0_i32 = arith.constant 0 : i32
    %c0_i32_0 = arith.constant 0 : i32
    %c0_i32_1 = arith.constant 0 : i32
    return %arg0, %c0_i32, %c0_i32_0 : i32, i32, i32
  }
  func.func @transform_5(%arg0: i32) -> (i32, i32) {
    %c0_i32 = arith.constant 0 : i32
    %c0_i32_0 = arith.constant 0 : i32
    %c0_i32_1 = arith.constant 0 : i32
    return %c0_i32, %c0_i32_0 : i32, i32
  }
}

</mosaic_0001>

<bundles_post_ra>
// kernel: tpu_custom_call.1
= control target key start
LH: loop header
LB: loop body
LE: loop exit
PB: predicated region body
PF: predicated region fallthrough
CT: control target
= control target key end

     0   :  { %10 = vsyncpa [#allocation4], 0  ;;  %s1520_s0 = inlined_call_operand.hbm [shape: f32[4,256], index: 0, kind: input, shape index: {}]   ;;  %s1521_s1 = inlined_call_operand.hbm [shape: f32[256,256], index: 1, kind: input, shape index: {}]   ;;  %s1522_s2 = inlined_call_operand.hbm [shape: f32[2,256,256], index: 2, kind: input, shape index: {}]   ;;  %s1523_s3 = inlined_call_operand.vmem [shape: f32[2,1,256], index: 3, kind: input, shape index: {}]   ;;  %s1524_s4 = inlined_call_operand.vmem [shape: f32[2,1,256], index: 4, kind: input, shape index: {}]   ;;  %s1525_s5 = inlined_call_operand.hbm [shape: f32[4,256], index: 5, kind: output, shape index: {}]  }
   0x1   :  { %11 = vsyncpa [#allocation7], 0 }
   0x2   :  { %12 = vsyncpa [#allocation5], 0  ;;  %s1208_s18 = smov 0   ;;  %s1210_s19 = smov 0  }
   0x3   :  { %s1212_s20 = smov 0   ;;  %s1214_s21 = smov 0  }
   0x4 LB: > { %s1227_s22 = sadd.s32 4294967295, %s1169_s21   ;;  %s1230_s23 = sadd.s32 1, %s1169_s21   ;;  %s1169_s21 = sphi %s1214_s21, %s1546_s21   ;;  %s1165_s20 = sphi %s1212_s20, %s1545_s20   ;;  %s1161_s19 = sphi %s1210_s19, %s1544_s19   ;;  %s1157_s18 = sphi %s1208_s18, %s1543_s18  }
   0x5   : > { %s64_s24 = ssub.s32 %s1169_s21, %s1230_s23  ;;  %s67_s25 = sadd.s32 1, %s1165_s20 }
   0x6   : > { %p65_p0 = scmp.eq.s32.totalorder %s64_s24, 0  ;;  %p74_p1 = scmp.ne.s32.totalorder %s1165_s20, %s1161_s19 }
   0x7   : > { %p75_p2 = scmp.eq.s32.totalorder %s1169_s21, 0  ;;  %p80_p3 = scmp.ne.s32.totalorder %s1161_s19, %s1157_s18 }
   0x8   : > { %s1240_s26 = scalar_select %p65_p0, %s1165_s20, %s67_s25  }
   0x9   : > { %p1242_p4 = por %p75_p2, %p74_p1  ;;  %p1526_p5 = scmp.eq.s32.totalorder %s1227_s22, 0 }
   0xa   : > { %p787_p6 = scmp.ge.s32.totalorder %s1169_s21, 1  ;;  %p164_p7 = scmp.lt.s32.totalorder %s1169_s21, 3 }
   0xb   : > { %p1251_p8 = por %p1526_p5, %p80_p3  ;;  %s1171_s30 = smov [#allocation3]  }
   0xc   : > { %p1256_p10 = pnand %p787_p6, %p164_p7  ;;  %s177_s6 = sshll.u32 %s1171_s30, 4  ;;  %s178_s6 = int_to_ptr.vmem [resolvable:$true] %s177_s6 }
   0xd   : > { %s1531_s28 = scalar_select %p1251_p8, 1, 0 }
   0xe   : > { %s1532_s29 = scalar_select %p1256_p10, 1, 0 }
   0xf   : > { %p949_p11 = pneg %p1256_p10  ;;  %p962_p12 = scmp.lt.s32.totalorder %s1169_s21, 2 }
  0x10   : > { %s1172_s8 = smov [#allocation6]   ;;  %s1011_s13 = scalar_lea.hbm %s1520_s0, 128 }
  0x11   : > { %p1265_p13 = pnand %p949_p11, %p1526_p5  ;;  %s187_s9 = sshll.u32 %s1172_s8, 4  ;;  %s1275_s9 = int_to_ptr.vmem [resolvable:$true] %s187_s9 }
  0x12   : > { %p1271_p0 = pnand %p962_p12, %p1242_p4  ;;  %p1012_p1 = scmp.ne.s32.totalorder %s1520_s0, %s1011_s13 }
  0x13   : > { %p1013_p2 = pneg %p1265_p13  ;;  %p1018_p4 = scmp.lt.u32.totalorder %s1011_s13, %s1520_s0 }
  0x14   : > { %s1534_s10 = scalar_select %p1271_p0, 1, 0 }
  0x15   : > { %p1014_p3 = pnand %p1013_p2, %p1012_p1 }
  0x17   : > { %p1015_p6 = pneg %p1014_p3 }
  0x19   : > { %p1020_p7 = pnand %p1018_p4, %p1015_p6 }
  0x1b   : > { %1023 = shalt.err (!%p1020_p7)
}
  0x1c   : > { %s1024_s18 = scalar_lea.vmem %s178_s6, 128  ;;  %p1032_p5 = scmp.lt.s32.totalorder %s178_s6, %s178_s6 }
  0x1d   : > { %p1025_p11 = scmp.ne.s32.totalorder %s178_s6, %s1024_s18  ;;  %p1033_p8 = scmp.lt.s32.totalorder %s1024_s18, %s1024_s18 }
  0x1f   : > { %p1027_p12 = pnand %p1025_p11, %p1013_p2  ;;  %p1034_p10 = por %p1033_p8, %p1032_p5 }
  0x21   : > { %p1028_p9 = pneg %p1027_p12 }
  0x23   : > { %p1035_p0 = pnand %p1034_p10, %p1028_p9 }
  0x25   : > { %1038 = shalt.err (!%p1035_p0)
}
  0x26   : > { %952 = dma.hbm_to_vmem [thread:$0]  (!%p1265_p13), %s1520_s0, 128, %s178_s6, [#allocation4]  }
  0x27   : > { %s1039_s8 = scalar_lea.hbm %s1521_s1, 8192 }
  0x28   : > { %p1040_p1 = scmp.ne.s32.totalorder %s1521_s1, %s1039_s8  ;;  %p1046_p9 = scmp.lt.u32.totalorder %s1039_s8, %s1521_s1 }
  0x2a   : > { %p1042_p5 = pnand %p1040_p1, %p1013_p2 }
  0x2c   : > { %p1043_p8 = pneg %p1042_p5 }
  0x2e   : > { %p1048_p10 = pnand %p1046_p9, %p1043_p8 }
  0x30   : > { %1051 = shalt.err (!%p1048_p10)
}
  0x31   : > { %s1052_s6 = scalar_lea.vmem %s1275_s9, 8192  ;;  %p1060_p4 = scmp.lt.s32.totalorder %s1275_s9, %s1275_s9 }
  0x32   : > { %p1053_p0 = scmp.ne.s32.totalorder %s1275_s9, %s1052_s6  ;;  %p1061_p7 = scmp.lt.s32.totalorder %s1052_s6, %s1052_s6 }
  0x34   : > { %p1055_p3 = pnand %p1053_p0, %p1013_p2  ;;  %p1062_p11 = por %p1061_p7, %p1060_p4 }
  0x36   : > { %p1056_p6 = pneg %p1055_p3 }
  0x38   : > { %p1063_p12 = pnand %p1062_p11, %p1056_p6 }
  0x3a   : > { %1066 = shalt.err (!%p1063_p12)
}
  0x3b   : > { %s1173_s15 = smov 256   ;;  %s1174_s16 = smov 16  }
  0x3c   : > { %955 = dma.hbm_to_vmem [thread:$0]  (!%p1265_p13), %s1521_s1, 8192, %s1275_s9, [#allocation7], %s1173_s15, %s1173_s15, %s1174_s16  }
  0x3d   : > { %s201_s24 = sand.u32 1, %s1169_s21   ;;  %s203_s25 = sand.u32 1, %s1165_s20  }
  0x3e   : > { %s791_s27 = sshll.u32 %s203_s25, 9  ;;  %s806_s30 = sshll.u32 %s1169_s21, 13 }
  0x3f   : > { %s1333_s12 = scalar_lea.hbm %s1522_s2, %s806_s30  ;;  %s205_s7 = scalar_lea.vmem [#allocation8], %s791_s27 }
  0x40   : > { %s212_s13 = sshll.u32 %s205_s7, 4  ;;  %s1337_s14 = scalar_lea.sflag [#allocation4], %s201_s24  ;;  %s1335_s13 = int_to_ptr.vmem [resolvable:$true] %s212_s13 }
  0x41   : > { %s1067_s9 = scalar_lea.hbm %s1333_s12, 8192  ;;  %p1535_p2 = scmp.ne.s32.totalorder %s1534_s10, 0 }
  0x42   : > { %p1068_p13 = scmp.ne.s32.totalorder %s1333_s12, %s1067_s9  ;;  %s1072_s17 = scalar_lea.hbm %s1522_s2, 16384 }
  0x43   : > { %p1069_p1 = pneg %p1535_p2  ;;  %p1073_p9 = scmp.lt.u32.totalorder %s1333_s12, %s1522_s2 }
  0x44   : > { %p1074_p10 = scmp.lt.u32.totalorder %s1072_s17, %s1067_s9  ;;  %p1076_p3 = scmp.lt.u32.totalorder %s1067_s9, %s1333_s12 }
  0x45   : > { %p1070_p5 = pnand %p1069_p1, %p1068_p13 }
  0x46   : > { %p1075_p0 = por %p1074_p10, %p1073_p9 }
  0x47   : > { %p1071_p8 = pneg %p1070_p5 }
  0x48   : > { %p1077_p6 = por %p1076_p3, %p1075_p0 }
  0x4a   : > { %p1078_p4 = pnand %p1077_p6, %p1071_p8 }
  0x4c   : > { %1081 = shalt.err (!%p1078_p4)
}
  0x4d   : > { %s1082_s24 = scalar_lea.vmem %s1335_s13, 8192  ;;  %s1175_s27 = smov [#allocation8]  }
  0x4e   : > { %p1083_p7 = scmp.ne.s32.totalorder %s1335_s13, %s1082_s24  ;;  %s1087_s30 = sshll.u32 %s1175_s27, 4  ;;  %s1088_s30 = int_to_ptr.vmem [resolvable:$false] %s1087_s30 }
  0x4f   : > { %s1089_s8 = scalar_lea.vmem %s1088_s30, 16384  ;;  %p1090_p13 = scmp.lt.s32.totalorder %s1335_s13, %s1088_s30 }
  0x50   : > { %p1085_p11 = pnand %p1083_p7, %p1069_p1  ;;  %p1091_p5 = scmp.lt.s32.totalorder %s1089_s8, %s1082_s24 }
  0x52   : > { %p1086_p12 = pneg %p1085_p11  ;;  %p1092_p9 = por %p1091_p5, %p1090_p13 }
  0x54   : > { %p1093_p10 = pnand %p1092_p9, %p1086_p12 }
  0x56   : > { %1096 = shalt.err (!%p1093_p10)
}
  0x57   : > { %959 = dma.hbm_to_vmem [thread:$0]  (!%p1535_p2), %s1333_s12, 8192, %s1335_s13, %s1337_s14, %s1173_s15, %s1173_s15, %s1174_s16  }
  0x58   : > { %p1536_p1 = scmp.ne.s32.totalorder %s1532_s29, 0 }
  0x59   : > { %p1537_p8 = scmp.eq.s32.totalorder (!%p1536_p1), %s1227_s22, 0 }
  0x5a   : > { %238 = sbr.rel (%p1536_p1) target bundleno = 691 (0x2b3), region = 40 }
  0x61   : > { %1140 = dma.done.wait (%p1537_p8), [#allocation4], 128   ;;  %p1538_p0 = pmov %p1537_p8 }
  0x63   : > { %1142 = vsyncadd (%p1538_p0), [#allocation4], 4294967168  ;;  %p1539_p3 = pmov %p1538_p0 }
  0x64   : > { %p1540_p6 = pmov %p1538_p0 }
  0x65   : > { %1144 = dma.done.wait (%p1539_p3), [#allocation7], 8192  }
  0x66   : > { %1146 = vsyncadd (%p1540_p6), [#allocation7], 4294959104  ;;  %s248_s10 = sand.u32 1, %s1227_s22   ;;  %s250_s15 = sand.u32 1, %s1161_s19  }
  0x67   : > { %s797_s16 = sshll.u32 %s250_s15, 9  ;;  %s249_s29 = scalar_lea.sflag [#allocation4], %s248_s10 }
  0x68   : > { %s1380_s11 = scalar_lea.vmem [#allocation8], %s797_s16  ;;  %p1541_p2 = scmp.ne.s32.totalorder %s1531_s28, 0 }
  0x6a   : > { %1148 = dma.done.wait (%p1541_p2), %s249_s29, 8192  }
  0x6b   : > { %1150 = vsyncadd (%p1541_p2), %s249_s29, 4294959104  ;;  %p282_p4 = scmp.lt.s32.totalorder %s1227_s22, 1  ;;  %p1542_p7 = scmp.ne.s32.totalorder %s1227_s22, 0 }
  0x6c   : > { %v294_v0 = vld [vmem:[#allocation3] sm:$0xff] (!%p1542_p7) }
  0x6d   : > { %s283_s12 = scalar_select %p282_p4, %s1227_s22, 1 }
  0x6e   : > { %293 = sbr.rel (%p1542_p7) target bundleno = 117 (0x75), region = 56  ;;  %295 = vst [vmem:[#allocation2] sm:$0xff] (!%p1542_p7), %v294_v0 }
  0x6f   : > { %s798_s7 = sshll.u32 %s283_s12, 1 }
  0x70   : > { %s1391_s9 = scalar_lea.vmem %s1523_s3, %s798_s7  ;;  %s1396_s17 = scalar_lea.vmem %s1524_s4, %s798_s7 }
  0x75 PF: > { %v298_v1 = vld [vmem:[%s1380_s11 + $0x8] sm:$0xff]  ;;  %v300_v2 = vld [vmem:[%s1380_s11 + $0x18] sm:$0xff]  ;;  %v297_v3 = vld [vmem:[%s1380_s11] sm:$0xff]  ;;  %vm435_vm0 = vcmask 1043456   ;;  %p801_p11 = scmp.ne.s32.totalorder %s1227_s22, 1 }
  0x76   : > { %v807_v4 = vpack.c.bf16 %v300_v2, %v298_v1  ;;  %v299_v5 = vld [vmem:[%s1380_s11 + $0x10] sm:$0xff]  ;;  %v302_v6 = vld [vmem:[%s1380_s11 + $0x28] sm:$0xff]  ;;  %v304_v7 = vld [vmem:[%s1380_s11 + $0x38] sm:$0xff] }
  0x77   : > { %v809_v8 = vpack.c.bf16 %v299_v5, %v297_v3  ;;  %v811_v9 = vpack.c.bf16 %v304_v7, %v302_v6  ;;  %v301_v10 = vld [vmem:[%s1380_s11 + $0x20] sm:$0xff]  ;;  %v303_v11 = vld [vmem:[%s1380_s11 + $0x30] sm:$0xff]  ;;  %v306_v12 = vld [vmem:[%s1380_s11 + $0x48] sm:$0xff] }
  0x78   : > { %808 = vmatprep.subr.bf16.mxu0 %v807_v4  ;;  %v308_v13 = vld [vmem:[%s1380_s11 + $0x58] sm:$0xff]  ;;  %v813_v14 = vpack.c.bf16 %v303_v11, %v301_v10  ;;  %v305_v16 = vld [vmem:[%s1380_s11 + $0x40] sm:$0xff]  ;;  %v307_v17 = vld [vmem:[%s1380_s11 + $0x50] sm:$0xff] }
  0x79   : > { %810 = vmatpush1.bf16.msra.mxu0 %v809_v8  ;;  %v815_v15 = vpack.c.bf16 %v308_v13, %v306_v12  ;;  %v310_v18 = vld [vmem:[%s1380_s11 + $0x68] sm:$0xff]  ;;  %v312_v19 = vld [vmem:[%s1380_s11 + $0x78] sm:$0xff]  ;;  %v817_v20 = vpack.c.bf16 %v307_v17, %v305_v16  ;;  %v309_v22 = vld [vmem:[%s1380_s11 + $0x60] sm:$0xff] }
  0x7a   : > { %812 = vmatprep.subr.bf16.mxu0 %v811_v9  ;;  %v819_v21 = vpack.c.bf16 %v312_v19, %v310_v18  ;;  %v311_v23 = vld [vmem:[%s1380_s11 + $0x70] sm:$0xff]  ;;  %v314_v24 = vld [vmem:[%s1380_s11 + $0x88] sm:$0xff]  ;;  %v316_v25 = vld [vmem:[%s1380_s11 + $0x98] sm:$0xff] }
  0x7b   : > { %v821_v26 = vpack.c.bf16 %v311_v23, %v309_v22  ;;  %v823_v27 = vpack.c.bf16 %v316_v25, %v314_v24  ;;  %v313_v28 = vld [vmem:[%s1380_s11 + $0x80] sm:$0xff]  ;;  %v315_v29 = vld [vmem:[%s1380_s11 + $0x90] sm:$0xff]  ;;  %v318_v30 = vld [vmem:[%s1380_s11 + $0xa8] sm:$0xff] }
  0x7c   : > { %v320_v31 = vld [vmem:[%s1380_s11 + $0xb8] sm:$0xff]  ;;  %v825_v32 = vpack.c.bf16 %v315_v29, %v313_v28  ;;  %v317_v34 = vld [vmem:[%s1380_s11 + $0xa0] sm:$0xff]  ;;  %v319_v35 = vld [vmem:[%s1380_s11 + $0xb0] sm:$0xff] }
  0x7d   : > { %814 = vmatpush1.bf16.msra.mxu0 %v813_v14  ;;  %v827_v33 = vpack.c.bf16 %v320_v31, %v318_v30  ;;  %v322_v36 = vld [vmem:[%s1380_s11 + $0xc8] sm:$0xff]  ;;  %v324_v37 = vld [vmem:[%s1380_s11 + $0xd8] sm:$0xff]  ;;  %v829_v38 = vpack.c.bf16 %v319_v35, %v317_v34  ;;  %v321_v39 = vld [vmem:[%s1380_s11 + $0xc0] sm:$0xff] }
  0x7e   : > { %816 = vmatprep.subr.bf16.mxu0 %v815_v15  ;;  %v323_v40 = vld [vmem:[%s1380_s11 + $0xd0] sm:$0xff]  ;;  %v326_v41 = vld [vmem:[%s1380_s11 + $0xe8] sm:$0xff]  ;;  %v831_v42 = vpack.c.bf16 %v324_v37, %v322_v36  ;;  %v328_v43 = vld [vmem:[%s1380_s11 + $0xf8] sm:$0xff] }
  0x7f   : > { %v1430_v44 = vld [vmem:[#allocation2] sm:$0xff]  ;;  %v530_v45 = vld [vmem:[#allocation6 + $0x8] sm:$0xff]  ;;  %v532_v47 = vld [vmem:[#allocation6 + $0x18] sm:$0xff]  ;;  %v833_v55 = vpack.c.bf16 %v323_v40, %v321_v39  ;;  %v835_v60 = vpack.c.bf16 %v328_v43, %v326_v41 }
  0x80   : > { %v362_v46 = vcombine.high %v1430_v44, %v1430_v44  ;;  %v529_v48 = vld [vmem:[#allocation6] sm:$0xff]  ;;  %v531_v49 = vld [vmem:[#allocation6 + $0x10] sm:$0xff]  ;;  %v871_v50 = vpack.c.bf16 %v532_v47, %v530_v45  ;;  %v534_v52 = vld [vmem:[#allocation6 + $0x28] sm:$0xff] }
  0x81   : > { %818 = vmatpush1.bf16.msra.mxu0 %v817_v20  ;;  %v873_v51 = vpack.c.bf16 %v531_v49, %v529_v48  ;;  %v536_v53 = vld [vmem:[#allocation6 + $0x38] sm:$0xff]  ;;  %v533_v54 = vld [vmem:[#allocation6 + $0x20] sm:$0xff]  ;;  %v535_v57 = vld [vmem:[#allocation6 + $0x30] sm:$0xff] }
  0x82   : > { %820 = vmatprep.subr.bf16.mxu0 %v819_v21  ;;  %428 = vmatprep.mubr.f32.mxu0 %v362_v46  ;;  %v875_v56 = vpack.c.bf16 %v536_v53, %v534_v52  ;;  %v538_v58 = vld [vmem:[#allocation6 + $0x48] sm:$0xff]  ;;  %v540_v59 = vld [vmem:[#allocation6 + $0x58] sm:$0xff]  ;;  %v325_v61 = vld [vmem:[%s1380_s11 + $0xe0] sm:$0xff]  ;;  %v877_v1 = vpack.c.bf16 %v535_v57, %v533_v54 }
  0x83   : > { %v327_v62 = vld [vmem:[%s1380_s11 + $0xf0] sm:$0xff]  ;;  %872 = vmatprep.subr.bf16.mxu1 %v871_v50  ;;  %v330_v63 = vld [vmem:[%s1380_s11 + $0x108] sm:$0xff]  ;;  %v332_v0 = vld [vmem:[%s1380_s11 + $0x118] sm:$0xff]  ;;  %v879_v2 = vpack.c.bf16 %v540_v59, %v538_v58 }
  0x84   : > { %874 = vmatpush1.bf16.msra.mxu1 %v873_v51  ;;  %v537_v3 = vld [vmem:[#allocation6 + $0x40] sm:$0xff]  ;;  %v539_v4 = vld [vmem:[#allocation6 + $0x50] sm:$0xff]  ;;  %v837_v5 = vpack.c.bf16 %v327_v62, %v325_v61  ;;  %v542_v6 = vld [vmem:[#allocation6 + $0x68] sm:$0xff]  ;;  %v839_v8 = vpack.c.bf16 %v332_v0, %v330_v63 }
  0x85   : > { %822 = vmatpush1.bf16.msra.mxu0 %v821_v26  ;;  %876 = vmatprep.subr.bf16.mxu1 %v875_v56  ;;  %v544_v7 = vld [vmem:[#allocation6 + $0x78] sm:$0xff]  ;;  %v329_v9 = vld [vmem:[%s1380_s11 + $0x100] sm:$0xff]  ;;  %v331_v10 = vld [vmem:[%s1380_s11 + $0x110] sm:$0xff]  ;;  %v881_v13 = vpack.c.bf16 %v539_v4, %v537_v3 }
  0x86   : > { %824 = vmatprep.subr.bf16.mxu0 %v823_v27  ;;  %v334_v11 = vld [vmem:[%s1380_s11 + $0x128] sm:$0xff]  ;;  %v336_v12 = vld [vmem:[%s1380_s11 + $0x138] sm:$0xff]  ;;  %v883_v14 = vpack.c.bf16 %v544_v7, %v542_v6  ;;  %v841_v15 = vpack.c.bf16 %v331_v10, %v329_v9  ;;  %v333_v17 = vld [vmem:[%s1380_s11 + $0x120] sm:$0xff] }
  0x87   : > { %v843_v16 = vpack.c.bf16 %v336_v12, %v334_v11  ;;  %v335_v18 = vld [vmem:[%s1380_s11 + $0x130] sm:$0xff]  ;;  %v338_v19 = vld [vmem:[%s1380_s11 + $0x148] sm:$0xff]  ;;  %v340_v20 = vld [vmem:[%s1380_s11 + $0x158] sm:$0xff] }
  0x88   : > { %878 = vmatpush1.bf16.msra.mxu1 %v877_v1  ;;  %v845_v21 = vpack.c.bf16 %v335_v18, %v333_v17  ;;  %v847_v22 = vpack.c.bf16 %v340_v20, %v338_v19  ;;  %v337_v23 = vld [vmem:[%s1380_s11 + $0x140] sm:$0xff]  ;;  %v339_v24 = vld [vmem:[%s1380_s11 + $0x150] sm:$0xff]  ;;  %v342_v25 = vld [vmem:[%s1380_s11 + $0x168] sm:$0xff] }
  0x89   : > { %826 = vmatpush1.bf16.msra.mxu0 %v825_v32  ;;  %880 = vmatprep.subr.bf16.mxu1 %v879_v2  ;;  %v344_v26 = vld [vmem:[%s1380_s11 + $0x178] sm:$0xff]  ;;  %v849_v27 = vpack.c.bf16 %v339_v24, %v337_v23  ;;  %v341_v29 = vld [vmem:[%s1380_s11 + $0x160] sm:$0xff]  ;;  %v343_v30 = vld [vmem:[%s1380_s11 + $0x170] sm:$0xff] }
  0x8a   : > { %828 = vmatprep.subr.bf16.mxu0 %v827_v33  ;;  %v851_v28 = vpack.c.bf16 %v344_v26, %v342_v25  ;;  %v346_v31 = vld [vmem:[%s1380_s11 + $0x188] sm:$0xff]  ;;  %v348_v32 = vld [vmem:[%s1380_s11 + $0x198] sm:$0xff]  ;;  %v853_v33 = vpack.c.bf16 %v343_v30, %v341_v29  ;;  %v345_v35 = vld [vmem:[%s1380_s11 + $0x180] sm:$0xff] }
  0x8b   : > { %v855_v34 = vpack.c.bf16 %v348_v32, %v346_v31  ;;  %v347_v36 = vld [vmem:[%s1380_s11 + $0x190] sm:$0xff]  ;;  %v350_v37 = vld [vmem:[%s1380_s11 + $0x1a8] sm:$0xff]  ;;  %v349_v41 = vld [vmem:[%s1380_s11 + $0x1a0] sm:$0xff] }
  0x8c   : > { %882 = vmatpush1.bf16.msra.mxu1 %v881_v13  ;;  %v857_v39 = vpack.c.bf16 %v347_v36, %v345_v35  ;;  %v354_v43 = vld [vmem:[%s1380_s11 + $0x1c8] sm:$0xff]  ;;  %v356_v45 = vld [vmem:[%s1380_s11 + $0x1d8] sm:$0xff]  ;;  %v353_v48 = vld [vmem:[%s1380_s11 + $0x1c0] sm:$0xff] }
  0x8d   : > { %830 = vmatpush1.bf16.msra.mxu0 %v829_v38  ;;  %884 = vmatprep.subr.bf16.mxu1 %v883_v14  ;;  %v352_v38 = vld [vmem:[%s1380_s11 + $0x1b8] sm:$0xff]  ;;  %v863_v47 = vpack.c.bf16 %v356_v45, %v354_v43  ;;  %v355_v49 = vld [vmem:[%s1380_s11 + $0x1d0] sm:$0xff]  ;;  %v358_v50 = vld [vmem:[%s1380_s11 + $0x1e8] sm:$0xff] }
  0x8e   : > { %832 = vmatprep.subr.bf16.mxu0 %v831_v42  ;;  %v859_v40 = vpack.c.bf16 %v352_v38, %v350_v37  ;;  %v351_v42 = vld [vmem:[%s1380_s11 + $0x1b0] sm:$0xff]  ;;  %v360_v51 = vld [vmem:[%s1380_s11 + $0x1f8] sm:$0xff]  ;;  %v865_v52 = vpack.c.bf16 %v355_v49, %v353_v48  ;;  %v357_v54 = vld [vmem:[%s1380_s11 + $0x1e0] sm:$0xff] }
  0x8f   : > { %v861_v46 = vpack.c.bf16 %v351_v42, %v349_v41  ;;  %v867_v53 = vpack.c.bf16 %v360_v51, %v358_v50  ;;  %v541_v57 = vld [vmem:[#allocation6 + $0x60] sm:$0xff]  ;;  %v543_v58 = vld [vmem:[#allocation6 + $0x70] sm:$0xff]  ;;  %v548_v61 = vld [vmem:[#allocation6 + $0x98] sm:$0xff] }
  0x90   : > { %v885_v59 = vpack.c.bf16 %v543_v58, %v541_v57  ;;  %v545_v63 = vld [vmem:[#allocation6 + $0x80] sm:$0xff]  ;;  %v547_v0 = vld [vmem:[#allocation6 + $0x90] sm:$0xff]  ;;  %v550_v2 = vld [vmem:[#allocation6 + $0xa8] sm:$0xff] }
  0x91   : > { %834 = vmatpush1.bf16.msra.mxu0 %v833_v55  ;;  %v359_v55 = vld [vmem:[%s1380_s11 + $0x1f0] sm:$0xff]  ;;  %v889_v1 = vpack.c.bf16 %v547_v0, %v545_v63  ;;  %v552_v3 = vld [vmem:[#allocation6 + $0xb8] sm:$0xff]  ;;  %v553_v10 = vld [vmem:[#allocation6 + $0xc0] sm:$0xff] }
  0x92   : > { %836 = vmatprep.subr.bf16.mxu0 %v835_v60  ;;  %v869_v56 = vpack.c.bf16 %v359_v55, %v357_v54  ;;  %886 = vmatpush1.bf16.msra.mxu1 %v885_v59  ;;  %v546_v60 = vld [vmem:[#allocation6 + $0x88] sm:$0xff]  ;;  %v891_v4 = vpack.c.bf16 %v552_v3, %v550_v2  ;;  %v551_v6 = vld [vmem:[#allocation6 + $0xb0] sm:$0xff]  ;;  %v560_v14 = vld [vmem:[#allocation6 + $0xf8] sm:$0xff] }
  0x93   : > { %v887_v62 = vpack.c.bf16 %v548_v61, %v546_v60  ;;  %v555_v11 = vld [vmem:[#allocation6 + $0xd0] sm:$0xff]  ;;  %v558_v13 = vld [vmem:[#allocation6 + $0xe8] sm:$0xff]  ;;  %v564_v20 = vld [vmem:[#allocation6 + $0x118] sm:$0xff] }
  0x94   : > { %v897_v12 = vpack.c.bf16 %v555_v11, %v553_v10  ;;  %v559_v17 = vld [vmem:[#allocation6 + $0xf0] sm:$0xff]  ;;  %v562_v19 = vld [vmem:[#allocation6 + $0x108] sm:$0xff]  ;;  %v568_v26 = vld [vmem:[#allocation6 + $0x138] sm:$0xff] }
  0x95   : > { %838 = vmatpush1.bf16.msra.mxu0 %v837_v5  ;;  %888 = vmatprep.subr.bf16.mxu1 %v887_v62  ;;  %v549_v5 = vld [vmem:[#allocation6 + $0xa0] sm:$0xff]  ;;  %v563_v23 = vld [vmem:[#allocation6 + $0x110] sm:$0xff]  ;;  %v566_v25 = vld [vmem:[#allocation6 + $0x128] sm:$0xff] }
  0x96   : > { %840 = vmatprep.subr.bf16.mxu0 %v839_v8  ;;  %890 = vmatpush1.bf16.msra.mxu1 %v889_v1  ;;  %v893_v7 = vpack.c.bf16 %v551_v6, %v549_v5  ;;  %v556_v8 = vld [vmem:[#allocation6 + $0xd8] sm:$0xff]  ;;  %v567_v29 = vld [vmem:[#allocation6 + $0x130] sm:$0xff]  ;;  %v570_v31 = vld [vmem:[#allocation6 + $0x148] sm:$0xff] }
  0x97   : > { %892 = vmatprep.subr.bf16.mxu1 %v891_v4  ;;  %v572_v32 = vld [vmem:[#allocation6 + $0x158] sm:$0xff]  ;;  %v571_v35 = vld [vmem:[#allocation6 + $0x150] sm:$0xff]  ;;  %v574_v36 = vld [vmem:[#allocation6 + $0x168] sm:$0xff] }
  0x98   : > { %v576_v38 = vld [vmem:[#allocation6 + $0x178] sm:$0xff]  ;;  %v578_v42 = vld [vmem:[#allocation6 + $0x188] sm:$0xff]  ;;  %v579_v48 = vld [vmem:[#allocation6 + $0x190] sm:$0xff] }
  0x99   : > { %842 = vmatpush1.bf16.msra.mxu0 %v841_v15  ;;  %v899_v15 = vpack.c.bf16 %v560_v14, %v558_v13  ;;  %v915_v41 = vpack.c.bf16 %v576_v38, %v574_v36  ;;  %v580_v43 = vld [vmem:[#allocation6 + $0x198] sm:$0xff]  ;;  %v582_v49 = vld [vmem:[#allocation6 + $0x1a8] sm:$0xff]  ;;  %v583_v54 = vld [vmem:[#allocation6 + $0x1b0] sm:$0xff] }
  0x9a   : > { %844 = vmatprep.subr.bf16.mxu0 %v843_v16  ;;  %894 = vmatpush1.bf16.msra.mxu1 %v893_v7  ;;  %v557_v16 = vld [vmem:[#allocation6 + $0xe0] sm:$0xff]  ;;  %v584_v50 = vld [vmem:[#allocation6 + $0x1b8] sm:$0xff]  ;;  %v586_v55 = vld [vmem:[#allocation6 + $0x1c8] sm:$0xff] }
  0x9b   : > { %v901_v18 = vpack.c.bf16 %v559_v17, %v557_v16  ;;  %v585_v59 = vld [vmem:[#allocation6 + $0x1c0] sm:$0xff]  ;;  %v587_v60 = vld [vmem:[#allocation6 + $0x1d0] sm:$0xff]  ;;  %v590_v61 = vld [vmem:[#allocation6 + $0x1e8] sm:$0xff] }
  0x9c   : > { %v592_v62 = vld [vmem:[#allocation6 + $0x1f8] sm:$0xff]  ;;  %v929_v63 = vpack.c.bf16 %v587_v60, %v585_v59  ;;  %v589_v1 = vld [vmem:[#allocation6 + $0x1e0] sm:$0xff]  ;;  %v591_v2 = vld [vmem:[#allocation6 + $0x1f0] sm:$0xff] }
  0x9d   : > { %846 = vmatpush1.bf16.msra.mxu0 %v845_v21  ;;  %v903_v21 = vpack.c.bf16 %v564_v20, %v562_v19  ;;  %v931_v0 = vpack.c.bf16 %v592_v62, %v590_v61  ;;  %v933_v3 = vpack.c.bf16 %v591_v2, %v589_v1  ;;  %v515_v62 = vld [vmem:[%s1396_s17] sm:$0x3] }
  0x9e   : > { %848 = vmatprep.subr.bf16.mxu0 %v847_v22  ;;  %v561_v22 = vld [vmem:[#allocation6 + $0x100] sm:$0xff] }
  0x9f   : > { %v905_v24 = vpack.c.bf16 %v563_v23, %v561_v22 }
  0xa1   : > { %850 = vmatpush1.bf16.msra.mxu0 %v849_v27  ;;  %v907_v27 = vpack.c.bf16 %v568_v26, %v566_v25 }
  0xa2   : > { %852 = vmatprep.subr.bf16.mxu0 %v851_v28  ;;  %v565_v28 = vld [vmem:[#allocation6 + $0x120] sm:$0xff] }
  0xa3   : > { %v909_v30 = vpack.c.bf16 %v567_v29, %v565_v28 }
  0xa5   : > { %854 = vmatpush1.bf16.msra.mxu0 %v853_v33  ;;  %v911_v33 = vpack.c.bf16 %v572_v32, %v570_v31 }
  0xa6   : > { %856 = vmatprep.subr.bf16.mxu0 %v855_v34  ;;  %v569_v34 = vld [vmem:[#allocation6 + $0x140] sm:$0xff] }
  0xa7   : > { %v913_v37 = vpack.c.bf16 %v571_v35, %v569_v34 }
  0xa9   : > { %858 = vmatpush1.bf16.msra.mxu0 %v857_v39  ;;  %v573_v39 = vld [vmem:[#allocation6 + $0x160] sm:$0xff] }
  0xaa   : > { %860 = vmatprep.subr.bf16.mxu0 %v859_v40  ;;  %v575_v40 = vld [vmem:[#allocation6 + $0x170] sm:$0xff] }
  0xab   : > { %v917_v45 = vpack.c.bf16 %v575_v40, %v573_v39 }
  0xad   : > { %862 = vmatpush1.bf16.msra.mxu0 %v861_v46  ;;  %v919_v46 = vpack.c.bf16 %v580_v43, %v578_v42 }
  0xae   : > { %864 = vmatprep.subr.bf16.mxu0 %v863_v47  ;;  %v577_v47 = vld [vmem:[#allocation6 + $0x180] sm:$0xff] }
  0xaf   : > { %v921_v51 = vpack.c.bf16 %v579_v48, %v577_v47  ;;  %v1176_v48 = vmov 1966171168  }
  0xb1   : > { %866 = vmatpush1.bf16.msra.mxu0 %v865_v52  ;;  %v923_v52 = vpack.c.bf16 %v584_v50, %v582_v49  ;;  %v485_v49 = vunpack.c.l.s4 %v1176_v48  ;;  %v487_v50 = vlaneseq }
  0xb2   : > { %868 = vmatprep.subr.bf16.mxu0 %v867_v53  ;;  %v581_v53 = vld [vmem:[#allocation6 + $0x1a0] sm:$0xff] }
  0xb3   : > { %v925_v57 = vpack.c.bf16 %v583_v54, %v581_v53 }
  0xb5   : > { %870 = vmatpush1.bf16.msra.mxu0 %v869_v56  ;;  %v588_v56 = vld [vmem:[#allocation6 + $0x1d8] sm:$0xff] }
  0xb6   : > { %v927_v58 = vpack.c.bf16 %v588_v56, %v586_v55 }
  0xb8   : > { %429 = vmatmul.mubr.f32.vlgmr.msra.gmra.mrb[0].mxu0 %v1430_v44  ;;  %v554_v44 = vld [vmem:[#allocation6 + $0xc8] sm:$0xff] }
  0xb9   : > { %v895_v9 = vpack.c.bf16 %v556_v8, %v554_v44 }
  0xbb   : > { %896 = vmatprep.subr.bf16.mxu1 %v895_v9 }
  0xbc   : > { %898 = vmatpush1.bf16.msra.mxu1 %v897_v12 }
  0xbd   : > { %900 = vmatprep.subr.bf16.mxu1 %v899_v15 }
  0xc0   : > { %902 = vmatpush1.bf16.msra.mxu1 %v901_v18 }
  0xc1   : > { %904 = vmatprep.subr.bf16.mxu1 %v903_v21 }
  0xc4   : > { %906 = vmatpush1.bf16.msra.mxu1 %v905_v24 }
  0xc5   : > { %908 = vmatprep.subr.bf16.mxu1 %v907_v27 }
  0xc8   : > { %910 = vmatpush1.bf16.msra.mxu1 %v909_v30 }
  0xc9   : > { %912 = vmatprep.subr.bf16.mxu1 %v911_v33 }
  0xcc   : > { %914 = vmatpush1.bf16.msra.mxu1 %v913_v37 }
  0xcd   : > { %916 = vmatprep.subr.bf16.mxu1 %v915_v41 }
  0xd0   : > { %918 = vmatpush1.bf16.msra.mxu1 %v917_v45 }
  0xd1   : > { %920 = vmatprep.subr.bf16.mxu1 %v919_v46 }
  0xd4   : > { %922 = vmatpush1.bf16.msra.mxu1 %v921_v51  ;;  %v486_v51 = vunpack.c.0.s8 %v485_v49 }
  0xd5   : > { %924 = vmatprep.subr.bf16.mxu1 %v923_v52  ;;  %v488_v52 = vshrl.u32 %v487_v50, 7 }
  0xd7   : > { %v489_v54 = vsub.s32 %v486_v51, %v488_v52  ;;  %v505_v60 = vsub.s32 0, %v488_v52  ;;  %v509_v61 = vsub.s32 1, %v488_v52 }
  0xd8   : > { %926 = vmatpush1.bf16.msra.mxu1 %v925_v57 }
  0xd9   : > { %928 = vmatprep.subr.bf16.mxu1 %v927_v58  ;;  %v476_v58 = vld [vmem:[%s1391_s9] sm:$0x3]  ;;  %v524_v1 = vrot.slane %v515_v62, %v509_v61 }
  0xdc   : > { %930 = vmatpush1.bf16.msra.mxu1 %v929_v63 }
  0xdd   : > { %932 = vmatprep.subr.bf16.mxu1 %v931_v0  ;;  %v520_v0 = vrot.slane %v515_v62, %v505_v60 }
  0xe0   : > { %934 = vmatpush1.bf16.msra.mxu1 %v933_v3 }
 0x18b   : > { %v1469_v4 = vpop.f32.mrb[0].mxu0 }
 0x18c   : > { %v436_v5 = vsel %vm435_vm0, %v1469_v4, 0.0  ;;  %v450_v6 = vmul.f32 %v1469_v4, %v1469_v4  ;;  %v1474_v7 = vpop.f32.mrb[1].mxu0 }
 0x18d   : > { %v437_v44 = vrot.slane %v436_v5, 4  ;;  %v443_v8 = vsel %vm435_vm0, %v1474_v7, 0.0  ;;  %v451_v9 = vmul.f32 %v1474_v7, %v1474_v7 }
 0x18e   : > { %v452_v10 = vsel %vm435_vm0, %v450_v6, 0.0  ;;  %v444_v11 = vrot.slane %v443_v8, 4 }
 0x18f   : > { %v438_v12 = vadd.f32 %v437_v44, %v436_v5  ;;  %v453_v13 = vrot.slane %v452_v10, 4  ;;  %v459_v14 = vsel %vm435_vm0, %v451_v9, 0.0 }
 0x190   : > { %v445_v15 = vadd.f32 %v444_v11, %v443_v8  ;;  %v460_v16 = vrot.slane %v459_v14, 4 }
 0x191   : > { %v439_v17 = vrot.slane %v438_v12, 2  ;;  %v454_v18 = vadd.f32 %v453_v13, %v452_v10 }
 0x192   : > { %v446_v19 = vrot.slane %v445_v15, 2  ;;  %v461_v20 = vadd.f32 %v460_v16, %v459_v14 }
 0x193   : > { %v440_v21 = vadd.f32 %v439_v17, %v438_v12  ;;  %v455_v22 = vrot.slane %v454_v18, 2 }
 0x194   : > { %v447_v23 = vadd.f32 %v446_v19, %v445_v15  ;;  %v462_v24 = vrot.slane %v461_v20, 2 }
 0x195   : > { %v441_v25 = vrot.slane %v440_v21, 1  ;;  %v456_v26 = vadd.f32 %v455_v22, %v454_v18 }
 0x196   : > { %v448_v27 = vrot.slane %v447_v23, 1  ;;  %v463_v28 = vadd.f32 %v462_v24, %v461_v20 }
 0x197   : > { %v442_v29 = vadd.f32 %v441_v25, %v440_v21  ;;  %v457_v30 = vrot.slane %v456_v26, 1 }
 0x198   : > { %v449_v31 = vadd.f32 %v448_v27, %v447_v23  ;;  %v464_v32 = vrot.slane %v463_v28, 1 }
 0x199   : > { %v458_v33 = vadd.f32 %v457_v30, %v456_v26  ;;  %v466_v34 = vmul.f32 0.25, %v442_v29 }
 0x19a   : > { %v465_v35 = vadd.f32 %v464_v32, %v463_v28  ;;  %v467_v36 = vmul.f32 0.25, %v449_v31 }
 0x19b   : > { %v468_v37 = vmul.f32 0.25, %v458_v33  ;;  %v470_v38 = vmul.f32 %v466_v34, %v466_v34  ;;  %v500_v2 = vsub.f32 %v1469_v4, %v466_v34  ;;  %v675_v4 = vld [vmem:[#allocation3] sm:$0xff] (!%p801_p11) }
 0x19c   : > { %v469_v39 = vmul.f32 0.25, %v465_v35  ;;  %v471_v40 = vmul.f32 %v467_v36, %v467_v36  ;;  %v501_v3 = vsub.f32 %v1474_v7, %v467_v36  ;;  %v677_v16 = vcombine.high (!%p801_p11), %v675_v4, %v675_v4 }
 0x19d   : > { %v472_v41 = vsub.f32 %v468_v37, %v470_v38 }
 0x19e   : > { %v473_v42 = vsub.f32 %v469_v39, %v471_v40 }
 0x19f   : > { %v474_v43 = vmax.f32 %v472_v41, 0.0 }
 0x1a0   : > { %v475_v45 = vmax.f32 %v473_v42, 0.0 }
 0x1a1   : > { %v477_v46 = vadd.f32 1e-05, %v474_v43 }
 0x1a2   : > { %v478_v47 = vadd.f32 1e-05, %v475_v45 }
 0x1a3   : > { %1006 = vrsqrt.f32 %v477_v46 }
 0x1a4   : > { %1008 = vrsqrt.f32 %v478_v47 }
 0x1ad   : > { %v1007_v53 = vpop.eup %1006 }
 0x1ae   : > { %v1009_v55 = vpop.eup %1008 }
 0x1af   : > { %v483_v56 = vcombine.low %v1007_v53, %v1009_v55 }
 0x1b1   : > { %v490_v57 = vrot.slane %v483_v56, %v489_v54 }
 0x1b3   : > { %v497_v59 = vrot.slane %v490_v57, %v489_v54 }
 0x1b5   : > { %v499_v63 = vmul.f32 %v497_v59, %v476_v58 }
 0x1b7   : > { %v510_v5 = vrot.slane %v499_v63, %v509_v61  ;;  %v506_v6 = vrot.slane %v499_v63, %v505_v60 }
 0x1b9   : > { %v514_v44 = vmul.f32 %v510_v5, %v501_v3  ;;  %v513_v8 = vmul.f32 %v506_v6, %v500_v2 }
 0x1bb   : > { %v528_v9 = vadd.f32 %v524_v1, %v514_v44  ;;  %v527_v10 = vadd.f32 %v520_v0, %v513_v8 }
 0x1bd   : > { %657 = vmatprep.mubr.f32.mxu1 %v528_v9 }
 0x1be   : > { %658 = vmatmul.mubr.f32.vlgmr.msra.gmra.mrb[0].mxu1 %v527_v10 }
 0x291   : > { %v659_v11 = vpop.f32.mrb[0].mxu1  ;;  %674 = sbr.rel (%p801_p11) target bundleno = 666 (0x29a), region = 60 }
 0x292   : > { %v664_v12 = vmax.f32 %v659_v11, 0.0  ;;  %v661_v13 = vpop.f32.mrb[1].mxu1 }
 0x293   : > { %v665_v14 = vmax.f32 %v661_v13, 0.0 }
 0x294   : > { %v679_v7 = vadd.f32 (!%p801_p11), %v675_v4, %v664_v12 }
 0x295   : > { %v668_v15 = vcombine.low %v664_v12, %v665_v14  ;;  %v680_v17 = vadd.f32 (!%p801_p11), %v677_v16, %v665_v14 }
 0x297   : > { %670 = vst [vmem:[#allocation2] sm:$0xff] %v668_v15  ;;  %v683_v18 = vcombine.low (!%p801_p11), %v679_v7, %v680_v17 }
 0x299   : > { %685 = vst [vmem:[#allocation9] sm:$0xff] %v683_v18 }
 0x29a PF: > { %p965_p12 = scmp.eq.s32.totalorder %s1227_s22, 1  ;;  %s1177_s28 = smov [#allocation9]  }
 0x29b   : > { %s693_s18 = sshll.u32 %s1177_s28, 4  ;;  %s694_s18 = int_to_ptr.vmem [resolvable:$true] %s693_s18 }
 0x29c   : > { %s1097_s25 = scalar_lea.vmem %s694_s18, 128  ;;  %p1104_p10 = scmp.lt.s32.totalorder %s694_s18, %s694_s18 }
 0x29d   : > { %p1098_p13 = scmp.ne.s32.totalorder %s694_s18, %s1097_s25  ;;  %p1105_p1 = scmp.lt.s32.totalorder %s1097_s25, %s1097_s25 }
 0x29f   : > { %p1099_p5 = pnand %p1098_p13, %p965_p12  ;;  %p1106_p8 = por %p1105_p1, %p1104_p10 }
 0x2a1   : > { %p1100_p9 = pneg %p1099_p5 }
 0x2a3   : > { %p1107_p0 = pnand %p1106_p8, %p1100_p9 }
 0x2a5   : > { %1110 = shalt.err (!%p1107_p0)
}
 0x2a6   : > { %s1111_s30 = scalar_lea.hbm %s1525_s5, 128 }
 0x2a7   : > { %p1112_p3 = scmp.ne.s32.totalorder %s1525_s5, %s1111_s30  ;;  %p1117_p4 = scmp.lt.u32.totalorder %s1111_s30, %s1525_s5 }
 0x2a9   : > { %p1113_p6 = pnand %p1112_p3, %p965_p12 }
 0x2ab   : > { %p1114_p2 = pneg %p1113_p6 }
 0x2ad   : > { %p1119_p7 = pnand %p1117_p4, %p1114_p2 }
 0x2af   : > { %1122 = shalt.err (!%p1119_p7)
}
 0x2b0   : > { %946 = dma.vmem_to_hbm [thread:$0]  (%p965_p12), %s694_s18, 128, %s1525_s5, [#allocation5]  }
 0x2b1   : > { %1152 = dma.done.wait (%p965_p12), [#allocation5], 128  }
 0x2b2   : > { %1154 = vsyncadd (%p965_p12), [#allocation5], 4294967168 }
 0x2b3 PF: > { %p15_p11 = scmp.ge.s32.totalorder %s1230_s23, 4   ;;  %s1543_s18 = smov %s1161_s19 }
 0x2b4   : > { %s1544_s19 = smov %s1165_s20  ;;  %s1545_s20 = smov %s1240_s26 }
 0x2b5   : > { %s1546_s21 = smov %s1230_s23  ;;  %17 = sbr.rel (!%p15_p11) target bundleno = 4 (0x4), region = 98 }
 0x2bc   :  { %706 = vsyncpa [#allocation4], 1 }
 0x2bd   :  { %708 = vsyncpa [#allocation4 + $0x1], 1 }
 0x2be   :  { %709 = vsyncpa [#allocation7], 1 }
 0x2bf   :  { %710 = vsyncpa [#allocation5], 1 }
 0x2c0   :  { %712 = vsyncpa [#allocation5 + $0x1], 1 }

</bundles_post_ra>
